<compile_context>
chip_gen: v6e
topology: v6e:2x2x1
jax: 0.10.0
libtpu: 0.0.40
codegen_flags: <defaults>
</compile_context>

<pallas_src>
import numpy as np
import jax
import jax.numpy as jnp
from jax.experimental import pallas as pl
from jax.experimental.pallas import tpu as pltpu


LANE = 128      # lane width (last dim)
SUBLANE = 16    # batch-tile multiple valid for both f32 (8,128) and bf16 (16,128)


def _round_up(n, m):
    return ((n + m - 1) // m) * m


# --------------------------------------------------------------------------- #
# Kernel
# --------------------------------------------------------------------------- #
def actor_kernel(x_ref, w1_ref, b1_ref, w2_ref, b2_ref, w3_ref, b3_ref, out_ref):
    """Fused 3-layer MLP + numerically-stable softmax for one batch tile."""
    cdt = w1_ref.dtype  # matmul operand dtype (bf16 fast path or f32)

    # Layer 1: Linear + ReLU  (MXU matmul, f32 accumulate; bias/ReLU in f32).
    h1 = jnp.dot(x_ref[...], w1_ref[...], preferred_element_type=jnp.float32)
    h1 = jnp.maximum(h1 + b1_ref[...], 0.0)

    # Layer 2: Linear + ReLU.
    h2 = jnp.dot(h1.astype(cdt), w2_ref[...], preferred_element_type=jnp.float32)
    h2 = jnp.maximum(h2 + b2_ref[...], 0.0)

    # Layer 3: Linear -> logits.  Padded output lanes carry a -1e30 bias.
    logits = jnp.dot(h2.astype(cdt), w3_ref[...], preferred_element_type=jnp.float32)
    logits = logits + b3_ref[...]

    # Numerically-stable softmax (EUP exp/reciprocal, XLU row reductions).
    m = jnp.max(logits, axis=-1, keepdims=True)
    e = jnp.exp(logits - m)                      # padded lanes: exp(-huge) == 0
    denom = jnp.sum(e, axis=-1, keepdims=True)
    out_ref[...] = (e * pl.reciprocal(denom, approx=True)).astype(out_ref.dtype)


# --------------------------------------------------------------------------- #
# VMEM / tiling heuristics
# --------------------------------------------------------------------------- #
def _vmem_limit_bytes():
    """3/4 of per-core VMEM: ~96 MiB on v5e/v6e (128 MiB), ~48 MiB on v7x (64 MiB)."""
    cap = 64 << 20  # conservative fallback = v7x per-core VMEM
    try:
        info = pltpu.get_tpu_info()
        cap = int(getattr(info, "vmem_capacity_bytes", cap))
    except Exception:
        pass
    return max(32 << 20, (cap * 3) // 4)


def _pick_batch_tile(batch, in_p, hid_p, half_p, out_p, matmul_itemsize, budget_bytes):
    """Largest pipeline-friendly batch tile whose working set fits the VMEM budget."""
    # Resident weights + f32 biases; counted double-buffered to stay conservative.
    weight_bytes = 2 * ((in_p * hid_p + hid_p * half_p + half_p * out_p) * matmul_itemsize
                        + (hid_p + half_p + out_p) * 4)
    target = _round_up(max(batch, SUBLANE), SUBLANE)
    # Prefer >= 2 grid steps so both v7x TensorCores get work (no-op on v5e/v6e).
    cap = max(SUBLANE, target // 2) if target >= 2 * SUBLANE else target
    for cand in (1024, 512, 256, 128, 64, 32, 16):
        if cand > cap:
            continue
        per_tile = (2 * cand * in_p * matmul_itemsize        # double-buffered x stream
                    + 2 * cand * out_p * 4                   # double-buffered out stream
                    + cand * (hid_p + half_p + out_p) * 4)   # f32 intermediates
        if weight_bytes + per_tile <= budget_bytes:
            return cand
    return SUBLANE


# --------------------------------------------------------------------------- #
# Host-side parameter prep (one-time)
# --------------------------------------------------------------------------- #
def prepare_actor_params(params, matmul_dtype=jnp.bfloat16):
    """Pad all feature dims to multiples of 128 (lane-dense tiles, unmasked
    stores) and cast weights to the matmul dtype. Biases stay f32; padded
    output lanes get a -1e30 bias so softmax gives them ~0 probability."""
    w1, b1, w2, b2, w3, b3 = params
    in_size, hidden = w1.shape
    half = w2.shape[1]
    out_size = w3.shape[1]
    in_p, hid_p, half_p, out_p = (
        _round_up(d, LANE) for d in (in_size, hidden, half, out_size))

    def pad2(a, rows, cols):
        a = a.reshape((-1, a.shape[-1]))
        return jnp.pad(a, ((0, rows - a.shape[0]), (0, cols - a.shape[1])))

    w1p = pad2(w1, in_p, hid_p).astype(matmul_dtype)
    w2p = pad2(w2, hid_p, half_p).astype(matmul_dtype)
    w3p = pad2(w3, half_p, out_p).astype(matmul_dtype)
    b1p = pad2(b1, 1, hid_p).astype(jnp.float32)
    b2p = pad2(b2, 1, half_p).astype(jnp.float32)
    b3p = jnp.full((1, out_p), -1e30, jnp.float32)      # finite: no NaN risk in exp
    b3p = b3p.at[0, :out_size].set(b3.reshape(-1).astype(jnp.float32))
    return (w1p, b1p, w2p, b2p, w3p, b3p, out_size)


# --------------------------------------------------------------------------- #
# Forward wrapper
# --------------------------------------------------------------------------- #
def actor_forward(x, prepared, *, batch_tile=None):
    """x: (batch, input_size). prepared: output of prepare_actor_params."""
    w1, b1, w2, b2, w3, b3, out_size = prepared
    B, in_size = x.shape
    in_p, hid_p = w1.shape
    half_p = w2.shape[1]
    out_p = w3.shape[1]
    mdt = w1.dtype
    msize = jnp.dtype(mdt).itemsize
    assert in_size <= in_p and out_size <= out_p

    vmem_limit = _vmem_limit_bytes()
    if batch_tile is None:
        batch_tile = _pick_batch_tile(B, in_p, hid_p, half_p, out_p, msize,
                                      budget_bytes=vmem_limit - (8 << 20))
    assert batch_tile % SUBLANE == 0, "batch_tile must be a multiple of 16"

    # Pad batch to a tile multiple (instead of degenerating to tiny tiles) and
    # features to the padded input width; cast the activation stream to the
    # matmul dtype (halves HBM traffic on the bf16 path).
    B_pad = _round_up(max(B, batch_tile), batch_tile)
    x_p = jnp.pad(x.astype(mdt), ((0, B_pad - B), (0, in_p - in_size)))
    grid = (B_pad // batch_tile,)

    weight_bytes = ((in_p * hid_p + hid_p * half_p + half_p * out_p) * msize
                    + (hid_p + half_p + out_p) * 4)
    cost = pl.CostEstimate(
        flops=2 * B_pad * (in_p * hid_p + hid_p * half_p + half_p * out_p),
        transcendentals=B_pad * out_p,
        bytes_accessed=x_p.size * msize + weight_bytes + B_pad * out_p * 4,
    )

    # Weights/biases are unchanged across grid steps: constant block index keeps
    # them resident in VMEM (no per-step re-DMA); footprint is accounted for at
    # 2x in the tile-size budget above.
    const_spec = lambda shape: pl.BlockSpec(shape, lambda i: (0, 0))

    probs = pl.pallas_call(
        actor_kernel,
        out_shape=jax.ShapeDtypeStruct((B_pad, out_p), jnp.float32),
        grid_spec=pltpu.PrefetchScalarGridSpec(
            num_scalar_prefetch=0,
            grid=grid,
            in_specs=[
                pl.BlockSpec((batch_tile, in_p), lambda i: (i, 0)),
                const_spec((in_p, hid_p)),
                const_spec((1, hid_p)),
                const_spec((hid_p, half_p)),
                const_spec((1, half_p)),
                const_spec((half_p, out_p)),
                const_spec((1, out_p)),
            ],
            out_specs=pl.BlockSpec((batch_tile, out_p), lambda i: (i, 0)),
        ),
        compiler_params=pltpu.CompilerParams(
            dimension_semantics=("parallel",),
            vmem_limit_bytes=int(vmem_limit),
        ),
        cost_estimate=cost,
    )(x_p, w1, b1, w2, b2, w3, b3)

    return probs[:B, :out_size].astype(x.dtype)


# --------------------------------------------------------------------------- #
# Init (matches torch: xavier_uniform_ weights, zero biases) and reference
# --------------------------------------------------------------------------- #
def xavier_uniform(key, fan_in, fan_out, dtype=jnp.float32):
    limit = float(np.sqrt(6.0 / (fan_in + fan_out)))
    # Stored as (in, out) — transpose of torch's (out, in) weight layout.
    return jax.random.uniform(key, (fan_in, fan_out), dtype, -limit, limit)


def init_actor_params(key, input_size, hidden_size, output_size, dtype=jnp.float32):
    k1, k2, k3 = jax.random.split(key, 3)
    half = hidden_size // 2
    w1 = xavier_uniform(k1, input_size, hidden_size, dtype)
    b1 = jnp.zeros((1, hidden_size), dtype)
    w2 = xavier_uniform(k2, hidden_size, half, dtype)
    b2 = jnp.zeros((1, half), dtype)
    w3 = xavier_uniform(k3, half, output_size, dtype)
    b3 = jnp.zeros((1, output_size), dtype)
    return (w1, b1, w2, b2, w3, b3)


def actor_reference(x, params):
    """Plain-JAX f32 reference for correctness checks."""
    w1, b1, w2, b2, w3, b3 = params
    h1 = jnp.maximum(x @ w1 + b1, 0.0)
    h2 = jnp.maximum(h1 @ w2 + b2, 0.0)
    logits = h2 @ w3 + b3
    return jax.nn.softmax(logits, axis=-1)


if __name__ == "__main__":
    key = jax.random.PRNGKey(0)
    k_x, k_p = jax.random.split(key)

    batch, input_size, hidden_size, output_size = 8, 16, 32, 4
    x = jax.random.normal(k_x, (batch, input_size), jnp.float32)
    params = init_actor_params(k_p, input_size, hidden_size, output_size)
    ref = np.asarray(actor_reference(x, params))

    # Tight check with f32 matmul operands (only the approx reciprocal differs).
    out_f32 = jax.block_until_ready(
        actor_forward(x, prepare_actor_params(params, jnp.float32)))
    assert out_f32.shape == (batch, output_size), out_f32.shape
    np.testing.assert_allclose(np.asarray(out_f32), ref, rtol=1e-2, atol=5e-3)

    # Default fast path: bf16 matmul operands, f32 accumulation.
    out = jax.block_until_ready(
        actor_forward(x, prepare_actor_params(params, jnp.bfloat16)))
    assert out.shape == (batch, output_size), out.shape
    np.testing.assert_allclose(np.asarray(out), ref, rtol=5e-2, atol=1e-2)
    # Rows are valid probability distributions (padded lanes contribute ~0).
    np.testing.assert_allclose(np.asarray(out).sum(-1), np.ones(batch),
                               rtol=1e-2, atol=1e-2)

    print("KERNEL_OK")
</pallas_src>

<mosaic_0001>
module attributes {stable_mosaic.version = 11 : i64} {
  func.func @actor_kernel(%arg0: i32, %arg1: memref<16x128xf32, #tpu.memory_space<vmem>>, %arg2: memref<128x128xf32, #tpu.memory_space<vmem>>, %arg3: memref<1x128xf32, #tpu.memory_space<vmem>>, %arg4: memref<128x128xf32, #tpu.memory_space<vmem>>, %arg5: memref<1x128xf32, #tpu.memory_space<vmem>>, %arg6: memref<128x128xf32, #tpu.memory_space<vmem>>, %arg7: memref<1x128xf32, #tpu.memory_space<vmem>>, %arg8: memref<16x128xf32, #tpu.memory_space<vmem>>) attributes {dimension_semantics = [#tpu.dimension_semantics<parallel>], iteration_bounds = array<i64: 1>, scalar_prefetch = 0 : i64, scratch_operands = 0 : i64, tpu.core_type = #tpu.core_type<tc>, window_params = [{transform_indices = @transform_0, window_bounds = array<i64: 16, 128>}, {pipeline_mode = #tpu.pipeline_mode<synchronous>, transform_indices = @transform_1, window_bounds = array<i64: 128, 128>}, {pipeline_mode = #tpu.pipeline_mode<synchronous>, transform_indices = @transform_2, window_bounds = array<i64: 1, 128>}, {pipeline_mode = #tpu.pipeline_mode<synchronous>, transform_indices = @transform_3, window_bounds = array<i64: 128, 128>}, {pipeline_mode = #tpu.pipeline_mode<synchronous>, transform_indices = @transform_4, window_bounds = array<i64: 1, 128>}, {pipeline_mode = #tpu.pipeline_mode<synchronous>, transform_indices = @transform_5, window_bounds = array<i64: 128, 128>}, {pipeline_mode = #tpu.pipeline_mode<synchronous>, transform_indices = @transform_6, window_bounds = array<i64: 1, 128>}, {transform_indices = @transform_7, window_bounds = array<i64: 16, 128>}]} {
    %c0 = arith.constant 0 : index
    %c0_0 = arith.constant 0 : index
    %0 = vector.load %arg1[%c0, %c0_0] : memref<16x128xf32, #tpu.memory_space<vmem>>, vector<16x128xf32>
    %c0_1 = arith.constant 0 : index
    %c0_2 = arith.constant 0 : index
    %1 = vector.load %arg2[%c0_1, %c0_2] : memref<128x128xf32, #tpu.memory_space<vmem>>, vector<128x128xf32>
    %cst = arith.constant dense<0.000000e+00> : vector<16x128xf32>
    %2 = tpu.matmul %0, %1, %cst {dimension_numbers = #tpu.dot_dimension_numbers<[1], [0], [0], [1], [0, 0, 1, 1], [], []>} : vector<16x128xf32>, vector<128x128xf32>, vector<16x128xf32> -> vector<16x128xf32>
    %c0_3 = arith.constant 0 : index
    %c0_4 = arith.constant 0 : index
    %3 = vector.load %arg3[%c0_3, %c0_4] : memref<1x128xf32, #tpu.memory_space<vmem>>, vector<1x128xf32>
    %4 = vector.broadcast %3 : vector<1x128xf32> to vector<16x128xf32>
    %5 = arith.addf %2, %4 : vector<16x128xf32>
    %cst_5 = arith.constant 0.000000e+00 : f32
    %6 = vector.broadcast %cst_5 : f32 to vector<16x128xf32>
    %7 = arith.maximumf %5, %6 : vector<16x128xf32>
    %c0_6 = arith.constant 0 : index
    %c0_7 = arith.constant 0 : index
    %8 = vector.load %arg4[%c0_6, %c0_7] : memref<128x128xf32, #tpu.memory_space<vmem>>, vector<128x128xf32>
    %cst_8 = arith.constant dense<0.000000e+00> : vector<16x128xf32>
    %9 = tpu.matmul %7, %8, %cst_8 {dimension_numbers = #tpu.dot_dimension_numbers<[1], [0], [0], [1], [0, 0, 1, 1], [], []>} : vector<16x128xf32>, vector<128x128xf32>, vector<16x128xf32> -> vector<16x128xf32>
    %c0_9 = arith.constant 0 : index
    %c0_10 = arith.constant 0 : index
    %10 = vector.load %arg5[%c0_9, %c0_10] : memref<1x128xf32, #tpu.memory_space<vmem>>, vector<1x128xf32>
    %11 = vector.broadcast %10 : vector<1x128xf32> to vector<16x128xf32>
    %12 = arith.addf %9, %11 : vector<16x128xf32>
    %cst_11 = arith.constant 0.000000e+00 : f32
    %13 = vector.broadcast %cst_11 : f32 to vector<16x128xf32>
    %14 = arith.maximumf %12, %13 : vector<16x128xf32>
    %c0_12 = arith.constant 0 : index
    %c0_13 = arith.constant 0 : index
    %15 = vector.load %arg6[%c0_12, %c0_13] : memref<128x128xf32, #tpu.memory_space<vmem>>, vector<128x128xf32>
    %cst_14 = arith.constant dense<0.000000e+00> : vector<16x128xf32>
    %16 = tpu.matmul %14, %15, %cst_14 {dimension_numbers = #tpu.dot_dimension_numbers<[1], [0], [0], [1], [0, 0, 1, 1], [], []>} : vector<16x128xf32>, vector<128x128xf32>, vector<16x128xf32> -> vector<16x128xf32>
    %c0_15 = arith.constant 0 : index
    %c0_16 = arith.constant 0 : index
    %17 = vector.load %arg7[%c0_15, %c0_16] : memref<1x128xf32, #tpu.memory_space<vmem>>, vector<1x128xf32>
    %18 = vector.broadcast %17 : vector<1x128xf32> to vector<16x128xf32>
    %19 = arith.addf %16, %18 : vector<16x128xf32>
    %cst_17 = arith.constant dense<0xFF800000> : vector<16xf32>
    %20 = vector.multi_reduction <maximumf>, %19, %cst_17 [1] : vector<16x128xf32> to vector<16xf32>
    %21 = vector.shape_cast %20 : vector<16xf32> to vector<16x1xf32>
    %22 = vector.broadcast %21 : vector<16x1xf32> to vector<16x128xf32>
    %23 = arith.subf %19, %22 : vector<16x128xf32>
    %24 = math.exp %23 : vector<16x128xf32>
    %cst_18 = arith.constant dense<0.000000e+00> : vector<16xf32>
    %25 = vector.multi_reduction <add>, %24, %cst_18 [1] : vector<16x128xf32> to vector<16xf32>
    %26 = vector.shape_cast %25 : vector<16xf32> to vector<16x1xf32>
    %27 = tpu.reciprocal %26 {approx = true} : vector<16x1xf32> -> vector<16x1xf32>
    %28 = vector.broadcast %27 : vector<16x1xf32> to vector<16x128xf32>
    %29 = arith.mulf %24, %28 : vector<16x128xf32>
    %c0_19 = arith.constant 0 : index
    %c0_20 = arith.constant 0 : index
    %30 = vector.load %arg8[%c0_19, %c0_20] : memref<16x128xf32, #tpu.memory_space<vmem>>, vector<16x128xf32>
    tpu.vector_store %arg8[%c0_19, %c0_20], %29 {strides = array<i32>} : memref<16x128xf32, #tpu.memory_space<vmem>>, vector<16x128xf32>,
    return
  }
  func.func @transform_0(%arg0: i32) -> (i32, i32) {
    %c0_i32 = arith.constant 0 : i32
    %c0_i32_0 = arith.constant 0 : i32
    return %arg0, %c0_i32 : i32, i32
  }
  func.func @transform_1(%arg0: i32) -> (i32, i32) {
    %c0_i32 = arith.constant 0 : i32
    %c0_i32_0 = arith.constant 0 : i32
    %c0_i32_1 = arith.constant 0 : i32
    return %c0_i32, %c0_i32_0 : i32, i32
  }
  func.func @transform_2(%arg0: i32) -> (i32, i32) {
    %c0_i32 = arith.constant 0 : i32
    %c0_i32_0 = arith.constant 0 : i32
    %c0_i32_1 = arith.constant 0 : i32
    return %c0_i32, %c0_i32_0 : i32, i32
  }
  func.func @transform_3(%arg0: i32) -> (i32, i32) {
    %c0_i32 = arith.constant 0 : i32
    %c0_i32_0 = arith.constant 0 : i32
    %c0_i32_1 = arith.constant 0 : i32
    return %c0_i32, %c0_i32_0 : i32, i32
  }
  func.func @transform_4(%arg0: i32) -> (i32, i32) {
    %c0_i32 = arith.constant 0 : i32
    %c0_i32_0 = arith.constant 0 : i32
    %c0_i32_1 = arith.constant 0 : i32
    return %c0_i32, %c0_i32_0 : i32, i32
  }
  func.func @transform_5(%arg0: i32) -> (i32, i32) {
    %c0_i32 = arith.constant 0 : i32
    %c0_i32_0 = arith.constant 0 : i32
    %c0_i32_1 = arith.constant 0 : i32
    return %c0_i32, %c0_i32_0 : i32, i32
  }
  func.func @transform_6(%arg0: i32) -> (i32, i32) {
    %c0_i32 = arith.constant 0 : i32
    %c0_i32_0 = arith.constant 0 : i32
    %c0_i32_1 = arith.constant 0 : i32
    return %c0_i32, %c0_i32_0 : i32, i32
  }
  func.func @transform_7(%arg0: i32) -> (i32, i32) {
    %c0_i32 = arith.constant 0 : i32
    %c0_i32_0 = arith.constant 0 : i32
    return %arg0, %c0_i32 : i32, i32
  }
}

</mosaic_0001>

<bundles_post_ra>
// kernel: tpu_custom_call.1
= control target key start
LH: loop header
LB: loop body
LE: loop exit
PB: predicated region body
PF: predicated region fallthrough
CT: control target
= control target key end

     0   :  { %12 = vsyncpa [#allocation3], 0  ;;  %s792_s0 = inlined_call_operand.hbm [shape: f32[16,128], index: 0, kind: input, shape index: {}]   ;;  %s793_s1 = inlined_call_operand.hbm [shape: f32[128,128], index: 1, kind: input, shape index: {}]   ;;  %s794_s2 = inlined_call_operand.vmem [shape: f32[1,128], index: 2, kind: input, shape index: {}]   ;;  %s795_s3 = inlined_call_operand.hbm [shape: f32[128,128], index: 3, kind: input, shape index: {}]   ;;  %s796_s4 = inlined_call_operand.vmem [shape: f32[1,128], index: 4, kind: input, shape index: {}]   ;;  %s797_s5 = inlined_call_operand.hbm [shape: f32[128,128], index: 5, kind: input, shape index: {}]   ;;  %s798_s6 = inlined_call_operand.vmem [shape: f32[1,128], index: 6, kind: input, shape index: {}]   ;;  %s799_s7 = inlined_call_operand.hbm [shape: f32[16,128], index: 7, kind: output, shape index: {}]  }
   0x1   :  { %13 = vsyncpa [#allocation6], 0 }
   0x2   :  { %14 = vsyncpa [#allocation9], 0 }
   0x3   :  { %15 = vsyncpa [#allocation4], 0  ;;  %s706_s24 = smov [#allocation5]   ;;  %s707_s26 = smov [#allocation2]  }
   0x4   :  { %s33_s25 = sshll.u32 %s706_s24, 4  ;;  %s21_s27 = sshll.u32 %s707_s26, 4  ;;  %s34_s25 = int_to_ptr.vmem [resolvable:$true] %s33_s25  ;;  %s22_s27 = int_to_ptr.vmem [resolvable:$true] %s21_s27 }
   0x5   :  { %s606_s28 = scalar_lea.vmem %s34_s25, 2048  ;;  %p611_p1 = scmp.lt.s32.totalorder %s34_s25, %s34_s25 }
   0x6   :  { %p607_p0 = scmp.ne.s32.totalorder %s34_s25, %s606_s28  ;;  %p612_p2 = scmp.lt.s32.totalorder %s606_s28, %s606_s28 }
   0x8   :  { %p613_p3 = por %p612_p2, %p611_p1 }
   0xa   :  { %p614_p4 = pnand %p613_p3, %p607_p0 }
   0xc   :  { %617 = shalt.err (!%p614_p4)
}
   0xd   :  { %s708_s29 = smov 128   ;;  %s709_s30 = smov 8  }
   0xe   :  { %39 = dma.hbm_to_vmem [thread:$0]  %s793_s1, 2048, %s34_s25, [#allocation6], %s708_s29, %s708_s29, %s709_s30  }
   0xf   :  { %s626_s10 = scalar_lea.vmem %s22_s27, 256  ;;  %p631_p6 = scmp.lt.s32.totalorder %s22_s27, %s22_s27 }
  0x10   :  { %p627_p5 = scmp.ne.s32.totalorder %s22_s27, %s626_s10  ;;  %p632_p7 = scmp.lt.s32.totalorder %s626_s10, %s626_s10 }
  0x12   :  { %p633_p8 = por %p632_p7, %p631_p6 }
  0x14   :  { %p634_p9 = pnand %p633_p8, %p627_p5 }
  0x16   :  { %637 = shalt.err (!%p634_p9)
}
  0x17   :  { %27 = dma.hbm_to_vmem [thread:$0]  %s792_s0, 256, %s22_s27, [#allocation3], %s708_s29, %s708_s29, %s709_s30  }
  0x18   :  { %s710_s13 = smov [#allocation7]   ;;  %s711_s15 = smov [#allocation8]  }
  0x19   :  { %s47_s14 = sshll.u32 %s710_s13, 4  ;;  %s61_s16 = sshll.u32 %s711_s15, 4  ;;  %s48_s14 = int_to_ptr.vmem [resolvable:$true] %s47_s14  ;;  %s62_s16 = int_to_ptr.vmem [resolvable:$true] %s61_s16 }
  0x1a   :  { %s646_s1 = scalar_lea.vmem %s48_s14, 2048  ;;  %p651_p11 = scmp.lt.s32.totalorder %s48_s14, %s48_s14 }
  0x1b   :  { %p647_p10 = scmp.ne.s32.totalorder %s48_s14, %s646_s1  ;;  %p652_p12 = scmp.lt.s32.totalorder %s646_s1, %s646_s1 }
  0x1d   :  { %p653_p13 = por %p652_p12, %p651_p11 }
  0x1f   :  { %p654_p0 = pnand %p653_p13, %p647_p10 }
  0x21   :  { %657 = shalt.err (!%p654_p0)
}
  0x22   :  { %53 = dma.hbm_to_vmem [thread:$0]  %s795_s3, 2048, %s48_s14, [#allocation6], %s708_s29, %s708_s29, %s709_s30  }
  0x23   :  { %s666_s0 = scalar_lea.vmem %s62_s16, 2048  ;;  %p671_p2 = scmp.lt.s32.totalorder %s62_s16, %s62_s16 }
  0x24   :  { %p667_p1 = scmp.ne.s32.totalorder %s62_s16, %s666_s0  ;;  %p672_p3 = scmp.lt.s32.totalorder %s666_s0, %s666_s0 }
  0x26   :  { %p673_p4 = por %p672_p3, %p671_p2 }
  0x28   :  { %p674_p5 = pnand %p673_p4, %p667_p1 }
  0x2a   :  { %677 = shalt.err (!%p674_p5)
}
  0x2b   :  { %67 = dma.hbm_to_vmem [thread:$0]  %s797_s5, 2048, %s62_s16, [#allocation9], %s708_s29, %s708_s29, %s709_s30  }
  0x2c   :  { %698 = dma.done.wait [#allocation3], 256  }
  0x2d   :  { %699 = vsyncadd [#allocation3], 4294967040 }
  0x2e   :  { %700 = dma.done.wait [#allocation6], 4096  }
  0x2f   :  { %701 = vsyncadd [#allocation6], 4294963200 }
  0x30   :  { %702 = dma.done.wait [#allocation9], 2048  }
  0x31   :  { %703 = vsyncadd [#allocation9], 4294965248  ;;  %v99_v0 = vld [vmem:[#allocation5 + $0x78] sm:$0xff]  ;;  %v98_v1 = vld [vmem:[#allocation5 + $0x70] sm:$0xff] }
  0x32   :  { %478 = vmatprep.subr.mxu0 %v99_v0  ;;  %v97_v2 = vld [vmem:[#allocation5 + $0x68] sm:$0xff]  ;;  %v96_v3 = vld [vmem:[#allocation5 + $0x60] sm:$0xff]  ;;  %v82_v4 = vld [vmem:[#allocation2] sm:$0xff] }
  0x33   :  { %479 = vmatpush3.msra.mxu0 %v99_v0  ;;  %v95_v5 = vld [vmem:[#allocation5 + $0x58] sm:$0xff]  ;;  %510 = vmatprep.mubr.f32.mxu0 %v82_v4  ;;  %v198_v7 = vld [vmem:[#allocation7 + $0x70] sm:$0xff]  ;;  %v197_v9 = vld [vmem:[#allocation7 + $0x68] sm:$0xff] }
  0x34   :  { %480 = vmatprep.subr.mxu0 %v98_v1  ;;  %v199_v6 = vld [vmem:[#allocation7 + $0x78] sm:$0xff]  ;;  %v94_v8 = vld [vmem:[#allocation5 + $0x50] sm:$0xff]  ;;  %v93_v10 = vld [vmem:[#allocation5 + $0x48] sm:$0xff] }
  0x35   :  { %481 = vmatpush3.msra.mxu0 %v98_v1  ;;  %513 = vmatprep.subr.mxu1 %v199_v6  ;;  %v196_v11 = vld [vmem:[#allocation7 + $0x60] sm:$0xff]  ;;  %v195_v13 = vld [vmem:[#allocation7 + $0x58] sm:$0xff]  ;;  %v194_v15 = vld [vmem:[#allocation7 + $0x50] sm:$0xff] }
  0x36   :  { %482 = vmatprep.subr.mxu0 %v97_v2  ;;  %514 = vmatpush3.msra.mxu1 %v199_v6  ;;  %v92_v12 = vld [vmem:[#allocation5 + $0x40] sm:$0xff]  ;;  %v91_v14 = vld [vmem:[#allocation5 + $0x38] sm:$0xff]  ;;  %v90_v16 = vld [vmem:[#allocation5 + $0x30] sm:$0xff] }
  0x37   :  { %483 = vmatpush3.msra.mxu0 %v97_v2  ;;  %515 = vmatprep.subr.mxu1 %v198_v7  ;;  %v193_v17 = vld [vmem:[#allocation7 + $0x48] sm:$0xff]  ;;  %v192_v19 = vld [vmem:[#allocation7 + $0x40] sm:$0xff]  ;;  %v191_v21 = vld [vmem:[#allocation7 + $0x38] sm:$0xff] }
  0x38   :  { %484 = vmatprep.subr.mxu0 %v96_v3  ;;  %516 = vmatpush3.msra.mxu1 %v198_v7  ;;  %v89_v18 = vld [vmem:[#allocation5 + $0x28] sm:$0xff]  ;;  %v88_v20 = vld [vmem:[#allocation5 + $0x20] sm:$0xff]  ;;  %v87_v22 = vld [vmem:[#allocation5 + $0x18] sm:$0xff] }
  0x39   :  { %485 = vmatpush3.msra.mxu0 %v96_v3  ;;  %517 = vmatprep.subr.mxu1 %v197_v9  ;;  %v190_v23 = vld [vmem:[#allocation7 + $0x30] sm:$0xff]  ;;  %v189_v25 = vld [vmem:[#allocation7 + $0x28] sm:$0xff]  ;;  %v188_v27 = vld [vmem:[#allocation7 + $0x20] sm:$0xff] }
  0x3a   :  { %486 = vmatprep.subr.mxu0 %v95_v5  ;;  %518 = vmatpush3.msra.mxu1 %v197_v9  ;;  %v86_v24 = vld [vmem:[#allocation5 + $0x10] sm:$0xff]  ;;  %v85_v26 = vld [vmem:[#allocation5 + $0x8] sm:$0xff]  ;;  %v84_v28 = vld [vmem:[#allocation5] sm:$0xff] }
  0x3b   :  { %487 = vmatpush3.msra.mxu0 %v95_v5  ;;  %519 = vmatprep.subr.mxu1 %v196_v11  ;;  %v83_v29 = vld [vmem:[#allocation2 + $0x8] sm:$0xff]  ;;  %v186_v31 = vld [vmem:[#allocation7 + $0x10] sm:$0xff]  ;;  %v185_v32 = vld [vmem:[#allocation7 + $0x8] sm:$0xff] }
  0x3c   :  { %488 = vmatprep.subr.mxu0 %v94_v8  ;;  %520 = vmatpush3.msra.mxu1 %v196_v11  ;;  %v187_v30 = vld [vmem:[#allocation7 + $0x18] sm:$0xff]  ;;  %v184_v33 = vld [vmem:[#allocation7] sm:$0xff]  ;;  %v298_v35 = vld [vmem:[#allocation8 + $0x70] sm:$0xff] }
  0x3d   :  { %489 = vmatpush3.msra.mxu0 %v94_v8  ;;  %521 = vmatprep.subr.mxu1 %v195_v13  ;;  %v299_v34 = vld [vmem:[#allocation8 + $0x78] sm:$0xff]  ;;  %v297_v36 = vld [vmem:[#allocation8 + $0x68] sm:$0xff]  ;;  %v296_v37 = vld [vmem:[#allocation8 + $0x60] sm:$0xff] }
  0x3e   :  { %490 = vmatprep.subr.mxu0 %v93_v10  ;;  %522 = vmatpush3.msra.mxu1 %v195_v13  ;;  %v295_v38 = vld [vmem:[#allocation8 + $0x58] sm:$0xff]  ;;  %v294_v39 = vld [vmem:[#allocation8 + $0x50] sm:$0xff]  ;;  %v293_v40 = vld [vmem:[#allocation8 + $0x48] sm:$0xff] }
  0x3f   :  { %491 = vmatpush3.msra.mxu0 %v93_v10  ;;  %523 = vmatprep.subr.mxu1 %v194_v15  ;;  %v292_v41 = vld [vmem:[#allocation8 + $0x40] sm:$0xff]  ;;  %v291_v42 = vld [vmem:[#allocation8 + $0x38] sm:$0xff]  ;;  %v290_v43 = vld [vmem:[#allocation8 + $0x30] sm:$0xff] }
  0x40   :  { %492 = vmatprep.subr.mxu0 %v92_v12  ;;  %524 = vmatpush3.msra.mxu1 %v194_v15  ;;  %v289_v44 = vld [vmem:[#allocation8 + $0x28] sm:$0xff]  ;;  %v288_v45 = vld [vmem:[#allocation8 + $0x20] sm:$0xff]  ;;  %v421_v46 = vld [vmem:[%s794_s2] ss:$0 sm:$0xff] }
  0x41   :  { %493 = vmatpush3.msra.mxu0 %v92_v12  ;;  %525 = vmatprep.subr.mxu1 %v193_v17  ;;  %v287_v53 = vld [vmem:[#allocation8 + $0x18] sm:$0xff]  ;;  %v286_v54 = vld [vmem:[#allocation8 + $0x10] sm:$0xff]  ;;  %v285_v55 = vld [vmem:[#allocation8 + $0x8] sm:$0xff] }
  0x42   :  { %494 = vmatprep.subr.mxu0 %v91_v14  ;;  %526 = vmatpush3.msra.mxu1 %v193_v17  ;;  %v284_v56 = vld [vmem:[#allocation8] sm:$0xff]  ;;  %v422_v57 = vld [vmem:[%s796_s4] ss:$0 sm:$0xff]  ;;  %s712_s4 = smov [#allocation10]  }
  0x43   :  { %495 = vmatpush3.msra.mxu0 %v91_v14  ;;  %527 = vmatprep.subr.mxu1 %v192_v19  ;;  %v423_v1 = vld [vmem:[%s798_s6] ss:$0 sm:$0xff]  ;;  %s407_s6 = sshll.u32 %s712_s4, 4  ;;  %s408_s6 = int_to_ptr.vmem [resolvable:$true] %s407_s6 }
  0x44   :  { %496 = vmatprep.subr.mxu0 %v90_v16  ;;  %528 = vmatpush3.msra.mxu1 %v192_v19  ;;  %s678_s24 = scalar_lea.vmem %s408_s6, 256  ;;  %p683_p7 = scmp.lt.s32.totalorder %s408_s6, %s408_s6 }
  0x45   :  { %497 = vmatpush3.msra.mxu0 %v90_v16  ;;  %529 = vmatprep.subr.mxu1 %v191_v21  ;;  %p679_p6 = scmp.ne.s32.totalorder %s408_s6, %s678_s24  ;;  %p684_p8 = scmp.lt.s32.totalorder %s678_s24, %s678_s24 }
  0x46   :  { %498 = vmatprep.subr.mxu0 %v89_v18  ;;  %530 = vmatpush3.msra.mxu1 %v191_v21 }
  0x47   :  { %499 = vmatpush3.msra.mxu0 %v89_v18  ;;  %531 = vmatprep.subr.mxu1 %v190_v23  ;;  %p685_p9 = por %p684_p8, %p683_p7 }
  0x48   :  { %500 = vmatprep.subr.mxu0 %v88_v20  ;;  %532 = vmatpush3.msra.mxu1 %v190_v23 }
  0x49   :  { %501 = vmatpush3.msra.mxu0 %v88_v20  ;;  %533 = vmatprep.subr.mxu1 %v189_v25  ;;  %p686_p10 = pnand %p685_p9, %p679_p6 }
  0x4a   :  { %502 = vmatprep.subr.mxu0 %v87_v22  ;;  %534 = vmatpush3.msra.mxu1 %v189_v25 }
  0x4b   :  { %503 = vmatpush3.msra.mxu0 %v87_v22  ;;  %535 = vmatprep.subr.mxu1 %v188_v27 }
  0x4c   :  { %504 = vmatprep.subr.mxu0 %v86_v24  ;;  %536 = vmatpush3.msra.mxu1 %v188_v27 }
  0x4d   :  { %505 = vmatpush3.msra.mxu0 %v86_v24  ;;  %537 = vmatprep.subr.mxu1 %v187_v30 }
  0x4e   :  { %506 = vmatprep.subr.mxu0 %v85_v26  ;;  %538 = vmatpush3.msra.mxu1 %v187_v30 }
  0x4f   :  { %507 = vmatpush3.msra.mxu0 %v85_v26  ;;  %539 = vmatprep.subr.mxu1 %v186_v31 }
  0x50   :  { %508 = vmatprep.subr.mxu0 %v84_v28  ;;  %540 = vmatpush3.msra.mxu1 %v186_v31 }
  0x51   :  { %509 = vmatpush3.msra.mxu0 %v84_v28  ;;  %541 = vmatprep.subr.mxu1 %v185_v32 }
  0x52   :  { %511 = vmatmul.mubr.f32.vlgmr.msra.gmra.mxu0 %v83_v29  ;;  %542 = vmatpush3.msra.mxu1 %v185_v32 }
  0x53   :  { %543 = vmatprep.subr.mxu1 %v184_v33  ;;  %548 = vmatprep.subr.mxu0 %v299_v34 }
  0x54   :  { %544 = vmatpush3.msra.mxu1 %v184_v33  ;;  %549 = vmatpush3.msra.mxu0 %v299_v34 }
  0x55   :  { %550 = vmatprep.subr.mxu0 %v298_v35 }
  0x56   :  { %551 = vmatpush3.msra.mxu0 %v298_v35 }
  0x57   :  { %552 = vmatprep.subr.mxu0 %v297_v36 }
  0x58   :  { %553 = vmatpush3.msra.mxu0 %v297_v36 }
  0x59   :  { %554 = vmatprep.subr.mxu0 %v296_v37 }
  0x5a   :  { %555 = vmatpush3.msra.mxu0 %v296_v37 }
  0x5b   :  { %556 = vmatprep.subr.mxu0 %v295_v38 }
  0x5c   :  { %557 = vmatpush3.msra.mxu0 %v295_v38 }
  0x5d   :  { %558 = vmatprep.subr.mxu0 %v294_v39 }
  0x5e   :  { %559 = vmatpush3.msra.mxu0 %v294_v39 }
  0x5f   :  { %560 = vmatprep.subr.mxu0 %v293_v40 }
  0x60   :  { %561 = vmatpush3.msra.mxu0 %v293_v40 }
  0x61   :  { %562 = vmatprep.subr.mxu0 %v292_v41 }
  0x62   :  { %563 = vmatpush3.msra.mxu0 %v292_v41 }
  0x63   :  { %564 = vmatprep.subr.mxu0 %v291_v42 }
  0x64   :  { %565 = vmatpush3.msra.mxu0 %v291_v42 }
  0x65   :  { %566 = vmatprep.subr.mxu0 %v290_v43 }
  0x66   :  { %567 = vmatpush3.msra.mxu0 %v290_v43 }
  0x67   :  { %568 = vmatprep.subr.mxu0 %v289_v44 }
  0x68   :  { %569 = vmatpush3.msra.mxu0 %v289_v44 }
  0x69   :  { %570 = vmatprep.subr.mxu0 %v288_v45 }
  0x6a   :  { %571 = vmatpush3.msra.mxu0 %v288_v45 }
  0x6b   :  { %572 = vmatprep.subr.mxu0 %v287_v53 }
  0x6c   :  { %573 = vmatpush3.msra.mxu0 %v287_v53 }
  0x6d   :  { %574 = vmatprep.subr.mxu0 %v286_v54 }
  0x6e   :  { %575 = vmatpush3.msra.mxu0 %v286_v54 }
  0x6f   :  { %576 = vmatprep.subr.mxu0 %v285_v55 }
  0x70   :  { %577 = vmatpush3.msra.mxu0 %v285_v55 }
  0x71   :  { %578 = vmatprep.subr.mxu0 %v284_v56 }
  0x72   :  { %579 = vmatpush3.msra.mxu0 %v284_v56 }
 0x112   :  { %v512_v47 = vpop.f32.mrf.mxu0 }
 0x113   :  { %v179_v48 = vadd.f32 %v512_v47, %v421_v46 }
 0x114   :  { %v173_v49 = vpop.f32.mrf.mxu0 }
 0x115   :  { %v174_v50 = vadd.f32 %v421_v46, %v173_v49  ;;  %v183_v52 = vmax.f32 %v179_v48, 0.0 }
 0x117   :  { %v182_v51 = vmax.f32 %v174_v50, 0.0 }
 0x119   :  { %545 = vmatprep.mubr.f32.mxu1 %v182_v51 }
 0x11a   :  { %546 = vmatmul.mubr.f32.vlgmr.msra.gmra.mxu1 %v183_v52 }
 0x1da   :  { %v547_v58 = vpop.f32.mrf.mxu1 }
 0x1db   :  { %v279_v59 = vadd.f32 %v547_v58, %v422_v57 }
 0x1dc   :  { %v273_v60 = vpop.f32.mrf.mxu1 }
 0x1dd   :  { %v274_v61 = vadd.f32 %v422_v57, %v273_v60  ;;  %v283_v63 = vmax.f32 %v279_v59, 0.0 }
 0x1df   :  { %v282_v62 = vmax.f32 %v274_v61, 0.0 }
 0x1e1   :  { %580 = vmatprep.mubr.f32.mxu0 %v282_v62 }
 0x1e2   :  { %581 = vmatmul.mubr.f32.vlgmr.msra.gmra.mxu0 %v283_v63 }
 0x2a2   :  { %v582_v0 = vpop.f32.mrf.mxu0 }
 0x2a3   :  { %v379_v4 = vadd.f32 %v582_v0, %v423_v1 }
 0x2a4   :  { %v373_v2 = vpop.f32.mrf.mxu0 }
 0x2a5   :  { %v374_v3 = vadd.f32 %v423_v1, %v373_v2 }
 0x2a7   :  { %382 = vmax.xlane.f32.xlu0 %v374_v3 }
 0x2ab   :  { %384 = vmax.xlane.f32.xlu0 %v379_v4 }
 0x330   :  { %v383_v5 = vpop.xlane.xlu0 %382 }
 0x331   :  { %v386_v6 = vsub.f32 %v374_v3, %v383_v5 }
 0x333   :  { %v388_v7 = vmul.f32 1.442695, %v386_v6 }
 0x334   :  { %v385_v8 = vpop.xlane.xlu0 %384 }
 0x335   :  { %590 = vpow2.f32 %v388_v7  ;;  %v387_v9 = vsub.f32 %v379_v4, %v385_v8 }
 0x337   :  { %v390_v10 = vmul.f32 1.442695, %v387_v9 }
 0x339   :  { %592 = vpow2.f32 %v390_v10 }
 0x342   :  { %v591_v11 = vpop.eup %590 }
 0x343   :  { %392 = vadd.xlane.f32.xlu1 %v591_v11 }
 0x346   :  { %v593_v12 = vpop.eup %592 }
 0x347   :  { %394 = vadd.xlane.f32.xlu1 %v593_v12 }
 0x3cc   :  { %v393_v13 = vpop.xlane.xlu1 %392 }
 0x3cd   :  { %594 = vrcp.f32 %v393_v13 }
 0x3d0   :  { %v395_v14 = vpop.xlane.xlu1 %394 }
 0x3d1   :  { %596 = vrcp.f32 %v395_v14 }
 0x3da   :  { %v595_v15 = vpop.eup %594 }
 0x3db   :  { %v398_v16 = vmul.f32 %v595_v15, %v591_v11 }
 0x3dd   :  { %400 = vst [vmem:[#allocation10] sm:$0xff] %v398_v16 }
 0x3de   :  { %v597_v17 = vpop.eup %596 }
 0x3df   :  { %v399_v18 = vmul.f32 %v597_v17, %v593_v12 }
 0x3e1   :  { %401 = vst [vmem:[#allocation10 + $0x8] sm:$0xff] %v399_v18 }
 0x3e2   :  { %689 = shalt.err (!%p686_p10)
}
 0x3e3   :  { %413 = dma.vmem_to_hbm [thread:$0]  %s408_s6, 256, %s799_s7, [#allocation4], %s708_s29, %s708_s29, %s709_s30  }
 0x3e4   :  { %704 = dma.done.wait [#allocation4], 256  }
 0x3e5   :  { %705 = vsyncadd [#allocation4], 4294967040 }
 0x3e6   :  { %417 = vsyncpa [#allocation3], 1 }
 0x3e7   :  { %418 = vsyncpa [#allocation6], 1 }
 0x3e8   :  { %419 = vsyncpa [#allocation9], 1 }
 0x3e9   :  { %420 = vsyncpa [#allocation4], 1 }

</bundles_post_ra>
